<compile_context>
chip_gen: v7x
topology: tpu7x:2x2x1
jax: 0.10.0
libtpu: 0.0.40
codegen_flags: <defaults>
</compile_context>

<pallas_src>
import jax
import jax.numpy as jnp
from jax.experimental import pallas as pl
from jax.experimental.pallas import tpu as pltpu


def _round_up(x, m):
    return ((x + m - 1) // m) * m


# ----------------------------- Pallas kernel ---------------------------------
def vqa_head_kernel(x_ref, w1_ref, b1_ref, w2_ref, b2_ref, o_ref, hn_ref):
    """Fused logit_fc: Linear(H,2H) -> GeLU -> LayerNorm(2H, eps=1e-12) -> Linear(2H,A).

    LayerNorm affine is pre-folded into (w2, b2). hn_ref is a per-batch-tile VMEM
    scratch holding the normalized activation, computed only on the first answer tile.
    """
    @pl.when(pl.program_id(1) == 0)
    def _():
        # Linear 1 (MXU, bf16 operands, f32 accumulation)
        h = jnp.dot(x_ref[...], w1_ref[...], preferred_element_type=jnp.float32)
        h = h + b1_ref[...]

        # GeLU -- tanh approximation of BERT's erf-based GeLU (f32 VPU/EUP math)
        # TODO(synk): switch to jax.lax.erf if bit-exact parity with BertGELU is needed.
        c = 0.7978845608028654  # sqrt(2/pi)
        h = 0.5 * h * (1.0 + jnp.tanh(c * (h + 0.044715 * h * h * h)))

        # BertLayerNorm (eps=1e-12): single-pass stats; affine folded into w2/b2.
        inv_n = 1.0 / h.shape[-1]
        s = jnp.sum(h, axis=-1, keepdims=True)
        s2 = jnp.sum(h * h, axis=-1, keepdims=True)
        mu = s * inv_n
        var = s2 * inv_n - mu * mu
        hn_ref[...] = (h - mu) * jax.lax.rsqrt(var + 1e-12)

    # Linear 2 (MXU) on the cached normalized activation.
    hn = hn_ref[...].astype(jnp.bfloat16)
    o_ref[...] = jnp.dot(hn, w2_ref[...], preferred_element_type=jnp.float32) + b2_ref[...]


def vqa_head(x, w1_bf16, b1, w2_bf16, b2, num_answers, *, tm=None, tn=None):
    """x: (B, H) f32. w1_bf16: (H, 2H) bf16. b1: (1, 2H) f32.
    w2_bf16: (2H, A_pad) bf16 (LN affine folded in, zero-padded to 128-multiple).
    b2: (1, A_pad) f32 (folded + padded). Returns (B, num_answers) f32 logits."""
    B, H = x.shape
    H2 = w1_bf16.shape[1]
    A_pad = w2_bf16.shape[1]
    assert A_pad % 128 == 0

    # Tile sizes: 128/256-wide lane-dense answer tiles; batch tile multiple of 16 (bf16 pack).
    if tm is None:
        tm = 256 if B >= 256 else _round_up(B, 16)
    if tn is None:
        tn = 256 if A_pad % 256 == 0 else 128
    B_pad = _round_up(B, tm)

    xp = jnp.pad(x, ((0, B_pad - B), (0, 0))).astype(jnp.bfloat16)

    grid = (B_pad // tm, A_pad // tn)

    # Explicit VMEM budget: double-buffered inputs/outputs + scratch, capped for v7x (64 MiB).
    step_bytes = (tm * H * 2 + H * H2 * 2 + H2 * 4 +
                  H2 * tn * 2 + tn * 4 + tm * tn * 4)
    vmem_limit = int(min(max(2 * step_bytes + tm * H2 * 4 + (4 << 20), 16 << 20), 64 << 20))

    out = pl.pallas_call(
        vqa_head_kernel,
        out_shape=jax.ShapeDtypeStruct((B_pad, A_pad), jnp.float32),
        grid=grid,
        in_specs=[
            pl.BlockSpec((tm, H), lambda i, j: (i, 0)),    # x: constant in j -> no re-DMA
            pl.BlockSpec((H, H2), lambda i, j: (0, 0)),    # w1: constant
            pl.BlockSpec((1, H2), lambda i, j: (0, 0)),    # b1: constant
            pl.BlockSpec((H2, tn), lambda i, j: (0, j)),   # w2 answer tile streams
            pl.BlockSpec((1, tn), lambda i, j: (0, j)),    # b2 answer tile
        ],
        out_specs=pl.BlockSpec((tm, tn), lambda i, j: (i, j)),
        scratch_shapes=[pltpu.VMEM((tm, H2), jnp.float32)],
        compiler_params=pltpu.CompilerParams(
            dimension_semantics=("parallel", "arbitrary"),
            vmem_limit_bytes=vmem_limit),
    )(xp, w1_bf16, b1, w2_bf16, b2)

    return out[:B, :num_answers]


# ----------------------------- Model wrapper ----------------------------------
class VQAModelPallas:
    """Synthetic, deterministic VQAModel. The encoder is a pooled-projection stub
    (the real UNITER transformer encoder has no clean single-kernel equivalent);
    the logit_fc head runs in the Pallas kernel above."""

    def __init__(self, num_answers, hid_dim=32, feat_dim=32, vocab=64, key=None):
        if key is None:
            key = jax.random.PRNGKey(0)
        ks = jax.random.split(key, 4)
        std = 0.02  # init_bert_weights: normal(0, 0.02), zero bias, LN gamma=1 beta=0
        self.hid_dim = hid_dim
        self.num_answers = num_answers
        # encoder stub params (glue, plain JAX)
        enc_in = feat_dim + 4 + feat_dim + 4 + hid_dim
        self.emb = std * jax.random.normal(ks[0], (vocab, hid_dim), jnp.float32)
        self.w_enc = std * jax.random.normal(ks[1], (enc_in, hid_dim), jnp.float32)
        self.b_enc = jnp.zeros((hid_dim,), jnp.float32)
        # logit_fc params (stored (in, out): y = x @ W + b, same math as nn.Linear)
        self.w1 = std * jax.random.normal(ks[2], (hid_dim, hid_dim * 2), jnp.float32)
        self.b1 = jnp.zeros((hid_dim * 2,), jnp.float32)
        self.gamma = jnp.ones((hid_dim * 2,), jnp.float32)
        self.beta = jnp.zeros((hid_dim * 2,), jnp.float32)
        self.w2 = std * jax.random.normal(ks[3], (hid_dim * 2, num_answers), jnp.float32)
        self.b2 = jnp.zeros((num_answers,), jnp.float32)
        self._prep_kernel_params()

    def _prep_kernel_params(self):
        A = self.num_answers
        A_pad = max(_round_up(A, 128), 128)
        # Fold LN affine into the second linear; zero-pad answer dim to a 128 multiple.
        w2f = self.gamma[:, None] * self.w2
        b2f = self.beta @ self.w2 + self.b2
        w2f = jnp.pad(w2f, ((0, 0), (0, A_pad - A)))
        b2f = jnp.pad(b2f, (0, A_pad - A))
        self._w1_k = self.w1.astype(jnp.bfloat16)
        self._b1_k = self.b1.reshape(1, -1)
        self._w2_k = w2f.astype(jnp.bfloat16)
        self._b2_k = b2f.reshape(1, -1).astype(jnp.float32)

    def encode(self, feat, pos, ocr_feats, ocr_pos, sent_ids):
        # TODO(synk): the real UNITER/LXMERT transformer encoder is not implemented;
        # a deterministic mean-pool + linear projection stands in for it.
        sent_emb = jnp.take(self.emb, sent_ids, axis=0)           # (b, seq, hid)
        pooled = jnp.concatenate(
            [feat.mean(axis=1), pos.mean(axis=1),
             ocr_feats.mean(axis=1), ocr_pos.mean(axis=1),
             sent_emb.mean(axis=1)], axis=-1)                     # (b, enc_in)
        return jnp.tanh(pooled @ self.w_enc + self.b_enc)         # (b, hid)

    def __call__(self, feat, pos, ocr_feats, ocr_pos, sent_ids):
        x = self.encode(feat, pos, ocr_feats, ocr_pos, sent_ids)  # (b, hid)
        return vqa_head(x, self._w1_k, self._b1_k, self._w2_k, self._b2_k,
                        self.num_answers)


# ----------------------------- Reference check ---------------------------------
def ref_head(x, w1, b1, gamma, beta, w2, b2):
    """Pure-JAX reference mirroring the kernel numerics (bf16 matmul operands,
    f32 accumulation, single-pass LN stats, folded LN affine)."""
    h = jnp.dot(x.astype(jnp.bfloat16), w1.astype(jnp.bfloat16),
                preferred_element_type=jnp.float32) + b1
    c = 0.7978845608028654
    h = 0.5 * h * (1.0 + jnp.tanh(c * (h + 0.044715 * h ** 3)))
    mu = jnp.mean(h, axis=-1, keepdims=True)
    var = jnp.mean(h * h, axis=-1, keepdims=True) - mu * mu
    hn = (h - mu) * jax.lax.rsqrt(var + 1e-12)
    w2f = (gamma[:, None] * w2).astype(jnp.bfloat16)
    b2f = beta @ w2 + b2
    return jnp.dot(hn.astype(jnp.bfloat16), w2f,
                   preferred_element_type=jnp.float32) + b2f


if __name__ == "__main__":
    b, o, f, ocr_o, seq = 2, 8, 32, 4, 8
    hid, num_answers, vocab = 32, 16, 64

    key = jax.random.PRNGKey(0)
    k_feat, k_pos, k_of, k_op, k_sent, k_params = jax.random.split(key, 6)

    feat = jax.random.normal(k_feat, (b, o, f), jnp.float32)
    pos = jax.random.uniform(k_pos, (b, o, 4), jnp.float32)
    ocr_feats = jax.random.normal(k_of, (b, ocr_o, f), jnp.float32)
    ocr_pos = jax.random.uniform(k_op, (b, ocr_o, 4), jnp.float32)
    sent_ids = jax.random.randint(k_sent, (b, seq), 0, vocab)

    model = VQAModelPallas(num_answers, hid_dim=hid, feat_dim=f, vocab=vocab, key=k_params)

    logits = model(feat, pos, ocr_feats, ocr_pos, sent_ids)
    jax.block_until_ready(logits)
    assert logits.shape == (b, num_answers), logits.shape

    # correctness of the fused head vs pure-JAX reference
    x_enc = model.encode(feat, pos, ocr_feats, ocr_pos, sent_ids)
    ref = ref_head(x_enc, model.w1, model.b1, model.gamma, model.beta, model.w2, model.b2)
    err = float(jnp.max(jnp.abs(logits - ref)))
    assert jnp.allclose(logits, ref, atol=1e-3, rtol=1e-3), err

    print("KERNEL_OK")
</pallas_src>

<mosaic_0001>
module attributes {stable_mosaic.version = 11 : i64} {
  func.func @vqa_head_kernel(%arg0: i32, %arg1: i32, %arg2: memref<16x32xbf16, #tpu.memory_space<vmem>>, %arg3: memref<32x64xbf16, #tpu.memory_space<vmem>>, %arg4: memref<1x64xf32, #tpu.memory_space<vmem>>, %arg5: memref<64x128xbf16, #tpu.memory_space<vmem>>, %arg6: memref<1x128xf32, #tpu.memory_space<vmem>>, %arg7: memref<16x128xf32, #tpu.memory_space<vmem>>, %arg8: memref<16x64xf32, #tpu.memory_space<vmem>>) attributes {dimension_semantics = [#tpu.dimension_semantics<parallel>, #tpu.dimension_semantics<arbitrary>], iteration_bounds = array<i64: 1, 1>, scalar_prefetch = 0 : i64, scratch_operands = 1 : i64, tpu.core_type = #tpu.core_type<tc>, window_params = [{transform_indices = @transform_0, window_bounds = array<i64: 16, 32>}, {pipeline_mode = #tpu.pipeline_mode<synchronous>, transform_indices = @transform_1, window_bounds = array<i64: 32, 64>}, {pipeline_mode = #tpu.pipeline_mode<synchronous>, transform_indices = @transform_2, window_bounds = array<i64: 1, 64>}, {transform_indices = @transform_3, window_bounds = array<i64: 64, 128>}, {transform_indices = @transform_4, window_bounds = array<i64: 1, 128>}, {transform_indices = @transform_5, window_bounds = array<i64: 16, 128>}]} {
    %c0_i32 = arith.constant 0 : i32
    %0 = arith.cmpi eq, %arg1, %c0_i32 : i32
    %1 = arith.extui %0 : i1 to i32
    %c0_i32_0 = arith.constant 0 : i32
    %2 = arith.cmpi ne, %1, %c0_i32_0 : i32
    scf.if %2 {
      %c0_8 = arith.constant 0 : index
      %c0_9 = arith.constant 0 : index
      %11 = vector.load %arg2[%c0_8, %c0_9] : memref<16x32xbf16, #tpu.memory_space<vmem>>, vector<16x32xbf16>
      %c0_10 = arith.constant 0 : index
      %c0_11 = arith.constant 0 : index
      %12 = vector.load %arg3[%c0_10, %c0_11] : memref<32x64xbf16, #tpu.memory_space<vmem>>, vector<32x64xbf16>
      %cst_12 = arith.constant dense<0.000000e+00> : vector<16x64xf32>
      %13 = tpu.matmul %11, %12, %cst_12 {dimension_numbers = #tpu.dot_dimension_numbers<[1], [0], [0], [1], [0, 0, 1, 1], [], []>} : vector<16x32xbf16>, vector<32x64xbf16>, vector<16x64xf32> -> vector<16x64xf32>
      %c0_13 = arith.constant 0 : index
      %c0_14 = arith.constant 0 : index
      %14 = vector.load %arg4[%c0_13, %c0_14] : memref<1x64xf32, #tpu.memory_space<vmem>>, vector<1x64xf32>
      %15 = vector.broadcast %14 : vector<1x64xf32> to vector<16x64xf32>
      %16 = arith.addf %13, %15 : vector<16x64xf32>
      %cst_15 = arith.constant 5.000000e-01 : f32
      %17 = vector.broadcast %cst_15 : f32 to vector<16x64xf32>
      %18 = arith.mulf %17, %16 : vector<16x64xf32>
      %cst_16 = arith.constant 4.471500e-02 : f32
      %19 = vector.broadcast %cst_16 : f32 to vector<16x64xf32>
      %20 = arith.mulf %19, %16 : vector<16x64xf32>
      %21 = arith.mulf %20, %16 : vector<16x64xf32>
      %22 = arith.mulf %21, %16 : vector<16x64xf32>
      %23 = arith.addf %16, %22 : vector<16x64xf32>
      %cst_17 = arith.constant 0.797884583 : f32
      %24 = vector.broadcast %cst_17 : f32 to vector<16x64xf32>
      %25 = arith.mulf %24, %23 : vector<16x64xf32>
      %26 = math.tanh %25 : vector<16x64xf32>
      %cst_18 = arith.constant 1.000000e+00 : f32
      %27 = vector.broadcast %cst_18 : f32 to vector<16x64xf32>
      %28 = arith.addf %27, %26 : vector<16x64xf32>
      %29 = arith.mulf %18, %28 : vector<16x64xf32>
      %cst_19 = arith.constant dense<0.000000e+00> : vector<16xf32>
      %30 = vector.multi_reduction <add>, %29, %cst_19 [1] : vector<16x64xf32> to vector<16xf32>
      %31 = vector.shape_cast %30 : vector<16xf32> to vector<16x1xf32>
      %32 = arith.mulf %29, %29 : vector<16x64xf32>
      %cst_20 = arith.constant dense<0.000000e+00> : vector<16xf32>
      %33 = vector.multi_reduction <add>, %32, %cst_20 [1] : vector<16x64xf32> to vector<16xf32>
      %34 = vector.shape_cast %33 : vector<16xf32> to vector<16x1xf32>
      %cst_21 = arith.constant 1.562500e-02 : f32
      %35 = vector.broadcast %cst_21 : f32 to vector<16x1xf32>
      %36 = arith.mulf %31, %35 : vector<16x1xf32>
      %cst_22 = arith.constant 1.562500e-02 : f32
      %37 = vector.broadcast %cst_22 : f32 to vector<16x1xf32>
      %38 = arith.mulf %34, %37 : vector<16x1xf32>
      %39 = arith.mulf %36, %36 : vector<16x1xf32>
      %40 = arith.subf %38, %39 : vector<16x1xf32>
      %41 = vector.broadcast %36 : vector<16x1xf32> to vector<16x64xf32>
      %42 = arith.subf %29, %41 : vector<16x64xf32>
      %cst_23 = arith.constant 9.99999996E-13 : f32
      %43 = vector.broadcast %cst_23 : f32 to vector<16x1xf32>
      %44 = arith.addf %40, %43 : vector<16x1xf32>
      %45 = math.rsqrt %44 : vector<16x1xf32>
      %46 = vector.broadcast %45 : vector<16x1xf32> to vector<16x64xf32>
      %47 = arith.mulf %42, %46 : vector<16x64xf32>
      %c0_24 = arith.constant 0 : index
      %c0_25 = arith.constant 0 : index
      %48 = vector.load %arg8[%c0_24, %c0_25] : memref<16x64xf32, #tpu.memory_space<vmem>>, vector<16x64xf32>
      tpu.vector_store %arg8[%c0_24, %c0_25], %47 {strides = array<i32>} : memref<16x64xf32, #tpu.memory_space<vmem>>, vector<16x64xf32>,
    } else {
    }
    %c0 = arith.constant 0 : index
    %c0_1 = arith.constant 0 : index
    %3 = vector.load %arg8[%c0, %c0_1] : memref<16x64xf32, #tpu.memory_space<vmem>>, vector<16x64xf32>
    %4 = arith.truncf %3 : vector<16x64xf32> to vector<16x64xbf16>
    %c0_2 = arith.constant 0 : index
    %c0_3 = arith.constant 0 : index
    %5 = vector.load %arg5[%c0_2, %c0_3] : memref<64x128xbf16, #tpu.memory_space<vmem>>, vector<64x128xbf16>
    %cst = arith.constant dense<0.000000e+00> : vector<16x128xf32>
    %6 = tpu.matmul %4, %5, %cst {dimension_numbers = #tpu.dot_dimension_numbers<[1], [0], [0], [1], [0, 0, 1, 1], [], []>} : vector<16x64xbf16>, vector<64x128xbf16>, vector<16x128xf32> -> vector<16x128xf32>
    %c0_4 = arith.constant 0 : index
    %c0_5 = arith.constant 0 : index
    %7 = vector.load %arg6[%c0_4, %c0_5] : memref<1x128xf32, #tpu.memory_space<vmem>>, vector<1x128xf32>
    %8 = vector.broadcast %7 : vector<1x128xf32> to vector<16x128xf32>
    %9 = arith.addf %6, %8 : vector<16x128xf32>
    %c0_6 = arith.constant 0 : index
    %c0_7 = arith.constant 0 : index
    %10 = vector.load %arg7[%c0_6, %c0_7] : memref<16x128xf32, #tpu.memory_space<vmem>>, vector<16x128xf32>
    tpu.vector_store %arg7[%c0_6, %c0_7], %9 {strides = array<i32>} : memref<16x128xf32, #tpu.memory_space<vmem>>, vector<16x128xf32>,
    return
  }
  func.func @transform_0(%arg0: i32, %arg1: i32) -> (i32, i32) {
    %c0_i32 = arith.constant 0 : i32
    %c0_i32_0 = arith.constant 0 : i32
    return %arg0, %c0_i32 : i32, i32
  }
  func.func @transform_1(%arg0: i32, %arg1: i32) -> (i32, i32) {
    %c0_i32 = arith.constant 0 : i32
    %c0_i32_0 = arith.constant 0 : i32
    %c0_i32_1 = arith.constant 0 : i32
    return %c0_i32, %c0_i32_0 : i32, i32
  }
  func.func @transform_2(%arg0: i32, %arg1: i32) -> (i32, i32) {
    %c0_i32 = arith.constant 0 : i32
    %c0_i32_0 = arith.constant 0 : i32
    %c0_i32_1 = arith.constant 0 : i32
    return %c0_i32, %c0_i32_0 : i32, i32
  }
  func.func @transform_3(%arg0: i32, %arg1: i32) -> (i32, i32) {
    %c0_i32 = arith.constant 0 : i32
    %c0_i32_0 = arith.constant 0 : i32
    return %c0_i32, %arg1 : i32, i32
  }
  func.func @transform_4(%arg0: i32, %arg1: i32) -> (i32, i32) {
    %c0_i32 = arith.constant 0 : i32
    %c0_i32_0 = arith.constant 0 : i32
    return %c0_i32, %arg1 : i32, i32
  }
  func.func @transform_5(%arg0: i32, %arg1: i32) -> (i32, i32) {
    %c0_i32 = arith.constant 0 : i32
    return %arg0, %arg1 : i32, i32
  }
}

</mosaic_0001>

<bundles_post_ra>
// kernel: tpu_custom_call.1
= control target key start
LH: loop header
LB: loop body
LE: loop exit
PB: predicated region body
PF: predicated region fallthrough
CT: control target
= control target key end

     0   :  { %10 = vsyncpa [#allocation4], 0  ;;  %s575_s0 = inlined_call_operand.hbm [shape: bf16[16,32], index: 0, kind: input, shape index: {}]   ;;  %s576_s1 = inlined_call_operand.hbm [shape: bf16[32,64], index: 1, kind: input, shape index: {}]   ;;  %s577_s2 = inlined_call_operand.vmem [shape: f32[1,64], index: 2, kind: input, shape index: {}]   ;;  %s578_s3 = inlined_call_operand.hbm [shape: bf16[64,128], index: 3, kind: input, shape index: {}]   ;;  %s579_s4 = inlined_call_operand.vmem [shape: f32[1,128], index: 4, kind: input, shape index: {}]   ;;  %s580_s5 = inlined_call_operand.hbm [shape: f32[16,128], index: 5, kind: output, shape index: {}]  }
   0x1   :  { %11 = vsyncpa [#allocation7], 0 }
   0x2   :  { %12 = vsyncpa [#allocation5], 0  ;;  %s458_s18 = smov [#allocation6]   ;;  %s459_s20 = smov [#allocation3]  }
   0x3   :  { %s30_s19 = sshll.u32 %s458_s18, 4  ;;  %s18_s21 = sshll.u32 %s459_s20, 4  ;;  %s31_s19 = int_to_ptr.vmem [resolvable:$true] %s30_s19  ;;  %s498_s21 = int_to_ptr.vmem [resolvable:$true] %s18_s21 }
   0x4   :  { %s364_s24 = scalar_lea.hbm %s576_s1, 256 }
   0x5   :  { %p365_p0 = scmp.ne.s32.totalorder %s576_s1, %s364_s24  ;;  %p368_p1 = scmp.lt.u32.totalorder %s364_s24, %s576_s1 }
   0x7   :  { %p370_p2 = pnand %p368_p1, %p365_p0 }
   0x9   :  { %373 = shalt.err (!%p370_p2)
}
   0xa   :  { %s374_s29 = scalar_lea.vmem %s31_s19, 256  ;;  %p379_p4 = scmp.lt.s32.totalorder %s31_s19, %s31_s19 }
   0xb   :  { %p375_p3 = scmp.ne.s32.totalorder %s31_s19, %s374_s29  ;;  %p380_p5 = scmp.lt.s32.totalorder %s374_s29, %s374_s29 }
   0xd   :  { %p381_p6 = por %p380_p5, %p379_p4 }
   0xf   :  { %p382_p7 = pnand %p381_p6, %p375_p3 }
  0x11   :  { %385 = shalt.err (!%p382_p7)
}
  0x12   :  { %s460_s30 = smov 64   ;;  %s461_s6 = smov 4  }
  0x13   :  { %36 = dma.hbm_to_vmem [thread:$0]  %s576_s1, 256, %s31_s19, [#allocation7], %s460_s30, %s460_s30, %s461_s6  }
  0x14   :  { %s386_s11 = scalar_lea.hbm %s575_s0, 128 }
  0x15   :  { %p387_p8 = scmp.ne.s32.totalorder %s575_s0, %s386_s11  ;;  %p390_p9 = scmp.lt.u32.totalorder %s386_s11, %s575_s0 }
  0x17   :  { %p392_p10 = pnand %p390_p9, %p387_p8 }
  0x19   :  { %395 = shalt.err (!%p392_p10)
}
  0x1a   :  { %s396_s16 = scalar_lea.vmem %s498_s21, 128  ;;  %p401_p12 = scmp.lt.s32.totalorder %s498_s21, %s498_s21 }
  0x1b   :  { %p397_p11 = scmp.ne.s32.totalorder %s498_s21, %s396_s16  ;;  %p402_p13 = scmp.lt.s32.totalorder %s396_s16, %s396_s16 }
  0x1d   :  { %p403_p0 = por %p402_p13, %p401_p12 }
  0x1f   :  { %p404_p1 = pnand %p403_p0, %p397_p11 }
  0x21   :  { %407 = shalt.err (!%p404_p1)
}
  0x22   :  { %24 = dma.hbm_to_vmem [thread:$0]  %s575_s0, 128, %s498_s21, [#allocation4], %s460_s30, %s460_s30, %s461_s6  }
  0x23   :  { %s462_s18 = smov [#allocation8]   ;;  %s408_s23 = scalar_lea.hbm %s578_s3, 512 }
  0x24   :  { %s44_s19 = sshll.u32 %s462_s18, 4  ;;  %p409_p2 = scmp.ne.s32.totalorder %s578_s3, %s408_s23  ;;  %s45_s19 = int_to_ptr.vmem [resolvable:$true] %s44_s19 }
  0x25   :  { %p412_p3 = scmp.lt.u32.totalorder %s408_s23, %s578_s3 }
  0x27   :  { %p414_p4 = pnand %p412_p3, %p409_p2 }
  0x29   :  { %417 = shalt.err (!%p414_p4)
}
  0x2a   :  { %s418_s28 = scalar_lea.vmem %s45_s19, 512  ;;  %p423_p6 = scmp.lt.s32.totalorder %s45_s19, %s45_s19 }
  0x2b   :  { %p419_p5 = scmp.ne.s32.totalorder %s45_s19, %s418_s28  ;;  %p424_p7 = scmp.lt.s32.totalorder %s418_s28, %s418_s28 }
  0x2d   :  { %p425_p8 = por %p424_p7, %p423_p6 }
  0x2f   :  { %p426_p9 = pnand %p425_p8, %p419_p5 }
  0x31   :  { %429 = shalt.err (!%p426_p9)
}
  0x32   :  { %50 = dma.hbm_to_vmem [thread:$0]  %s578_s3, 512, %s45_s19, [#allocation7], %s460_s30, %s460_s30, %s461_s6  }
  0x33   :  { %452 = dma.done.wait [#allocation4], 128  }
  0x34   :  { %453 = vsyncadd [#allocation4], 4294967168 }
  0x35   :  { %454 = dma.done.wait [#allocation7], 768  }
  0x36   :  { %455 = vsyncadd [#allocation7], 4294966528  ;;  %v463_v0 = vmov 0.0   ;;  %vm464_vm0 = vmmov 0   ;;  %v349_v1 = vld [vmem:[#allocation6] sm:$0xff]   ;;  %v350_v2 = vld [vmem:[#allocation6 + $0x8] sm:$0xff]  }
  0x37   :  { %319 = vmatprep.subr.bf16.mxu0 %v463_v0  ;;  %323 = vmatprep.mubr.msk.bf16.mxu0 %vm464_vm0, %v463_v0  ;;  %v351_v3 = vld [vmem:[#allocation3] sm:$0xff]   ;;  %vm97_vm1 = vcmask 261120   ;;  %v300_v4 = vld [vmem:[%s577_s2] ss:$0 sm:$0xff]  ;;  %vm160_vm2 = vcmask 523264   ;;  %v352_v35 = vld [vmem:[#allocation8] sm:$0xff]  }
  0x38   :  { %327 = vmatprep.subr.bf16.mxu1 %v463_v0  ;;  %335 = vmatprep.mubr.msk.bf16.mxu1 %vm464_vm0, %v463_v0  ;;  %v353_v36 = vld [vmem:[#allocation8 + $0x8] sm:$0xff]   ;;  %v354_v37 = vld [vmem:[#allocation8 + $0x10] sm:$0xff]   ;;  %v355_v38 = vld [vmem:[#allocation8 + $0x18] sm:$0xff]   ;;  %s465_s6 = smov [#allocation9]  }
  0x39   :  { %320 = vmatpush3.bf16.msra.mxu0 %v349_v1  ;;  %328 = vmatpush3.bf16.msra.mxu1 %v352_v35  ;;  %v305_v62 = vld [vmem:[%s579_s4] ss:$0 sm:$0xff]  ;;  %s287_s7 = sshll.u32 %s465_s6, 4  ;;  %s288_s7 = int_to_ptr.vmem [resolvable:$true] %s287_s7 }
  0x3a   :  { %321 = vmatprep.subr.bf16.mxu0 %v463_v0  ;;  %329 = vmatprep.subr.bf16.mxu1 %v463_v0  ;;  %s430_s8 = scalar_lea.vmem %s288_s7, 256  ;;  %p435_p11 = scmp.lt.s32.totalorder %s288_s7, %s288_s7 }
  0x3b   :  { %p431_p10 = scmp.ne.s32.totalorder %s288_s7, %s430_s8  ;;  %p436_p12 = scmp.lt.s32.totalorder %s430_s8, %s430_s8 }
  0x3d   :  { %322 = vmatpush3.bf16.msra.mxu0 %v350_v2  ;;  %330 = vmatpush3.bf16.msra.mxu1 %v353_v36  ;;  %p437_p13 = por %p436_p12, %p435_p11 }
  0x3e   :  { %331 = vmatprep.subr.bf16.mxu1 %v463_v0 }
  0x3f   :  { %p438_p0 = pnand %p437_p13, %p431_p10 }
  0x40   :  { %324 = vmatmul.mubr.msk.bf16.vlgmr.msra.gmra.mrb[0].mxu0 %vm97_vm1, %v351_v3 }
  0x41   :  { %332 = vmatpush3.bf16.msra.mxu1 %v354_v37 }
  0x42   :  { %333 = vmatprep.subr.bf16.mxu1 %v463_v0 }
  0x45   :  { %334 = vmatpush3.bf16.msra.mxu1 %v355_v38 }
 0x113   :  { %v135_v5 = vpop.f32.mrb[0].mxu0 }
 0x114   :  { %v136_v6 = vadd.f32 %v300_v4, %v135_v5  ;;  %v325_v7 = vpop.f32.mrb[1].mxu0 }
 0x115   :  { %v138_v8 = vpop.f32.mrb[2].mxu0 }
 0x116   :  { %v144_v9 = vmul.f32 0.044715, %v136_v6  ;;  %v139_v10 = vadd.f32 %v300_v4, %v138_v8  ;;  %v326_v11 = vpop.f32.mrb[3].mxu0  ;;  %v142_v22 = vmul.f32 0.5, %v136_v6 }
 0x118   :  { %v146_v12 = vmul.f32 %v144_v9, %v136_v6  ;;  %v145_v13 = vmul.f32 0.044715, %v139_v10  ;;  %v143_v26 = vmul.f32 0.5, %v139_v10 }
 0x11a   :  { %v147_v14 = vmul.f32 %v145_v13, %v139_v10  ;;  %v148_v15 = vmul.f32 %v146_v12, %v136_v6 }
 0x11c   :  { %v150_v16 = vadd.f32 %v148_v15, %v136_v6  ;;  %v149_v17 = vmul.f32 %v147_v14, %v139_v10 }
 0x11e   :  { %v152_v18 = vmul.f32 0.7978846, %v150_v16  ;;  %v151_v19 = vadd.f32 %v149_v17, %v139_v10 }
 0x120   :  { %356 = vtanh.f32 %v152_v18  ;;  %v153_v20 = vmul.f32 0.7978846, %v151_v19 }
 0x122   :  { %358 = vtanh.f32 %v153_v20 }
 0x12a   :  { %v357_v21 = vpop.eup %356 }
 0x12b   :  { %v156_v23 = vadd.f32 1.0, %v357_v21 }
 0x12c   :  { %v359_v24 = vpop.eup %358 }
 0x12d   :  { %v158_v25 = vmul.f32 %v156_v23, %v142_v22  ;;  %v157_v27 = vadd.f32 1.0, %v359_v24 }
 0x12f   :  { %v161_v28 = vsel %vm160_vm2, %v158_v25, 0.0  ;;  %v167_v29 = vmul.f32 %v158_v25, %v158_v25  ;;  %v159_v30 = vmul.f32 %v157_v27, %v143_v26 }
 0x130   :  { %162 = vadd.xlane.f32.xlu0 %v161_v28 }
 0x131   :  { %v169_v31 = vsel %vm160_vm2, %v167_v29, 0.0  ;;  %v168_v32 = vmul.f32 %v159_v30, %v159_v30  ;;  %v164_v33 = vsel %vm160_vm2, %v159_v30, 0.0 }
 0x132   :  { %170 = vadd.xlane.f32.xlu1 %v169_v31 }
 0x133   :  { %v172_v34 = vsel %vm160_vm2, %v168_v32, 0.0 }
 0x134   :  { %165 = vadd.xlane.f32.xlu0 %v164_v33 }
 0x136   :  { %173 = vadd.xlane.f32.xlu1 %v172_v34 }
 0x1bd   :  { %v163_v39 = vpop.xlane.xlu0 %162 }
 0x1be   :  { %v175_v40 = vmul.f32 0.015625, %v163_v39 }
 0x1bf   :  { %v171_v41 = vpop.xlane.xlu1 %170 }
 0x1c0   :  { %v179_v42 = vmul.f32 %v175_v40, %v175_v40  ;;  %v177_v43 = vmul.f32 0.015625, %v171_v41  ;;  %v183_v53 = vsub.f32 %v158_v25, %v175_v40 }
 0x1c1   :  { %v166_v44 = vpop.xlane.xlu0 %165 }
 0x1c2   :  { %v181_v45 = vsub.f32 %v177_v43, %v179_v42  ;;  %v176_v46 = vmul.f32 0.015625, %v166_v44 }
 0x1c3   :  { %v174_v47 = vpop.xlane.xlu1 %173 }
 0x1c4   :  { %v185_v48 = vadd.f32 1e-12, %v181_v45  ;;  %v180_v49 = vmul.f32 %v176_v46, %v176_v46  ;;  %v178_v50 = vmul.f32 0.015625, %v174_v47  ;;  %v184_v56 = vsub.f32 %v159_v30, %v176_v46 }
 0x1c6   :  { %360 = vrsqrt.f32 %v185_v48  ;;  %v182_v51 = vsub.f32 %v178_v50, %v180_v49 }
 0x1c8   :  { %v186_v52 = vadd.f32 1e-12, %v182_v51 }
 0x1ca   :  { %362 = vrsqrt.f32 %v186_v52 }
 0x1d0   :  { %v361_v54 = vpop.eup %360 }
 0x1d1   :  { %v189_v55 = vmul.f32 %v361_v54, %v183_v53 }
 0x1d3   :  { %191 = vst.msk [vmem:[#allocation2] sm:$0xff] %vm160_vm2, %v189_v55 }
 0x1d4   :  { %v363_v57 = vpop.eup %362 }
 0x1d5   :  { %v190_v58 = vmul.f32 %v363_v57, %v184_v56 }
 0x1d7   :  { %192 = vst.msk [vmem:[#allocation2 + $0x8] sm:$0xff] %vm160_vm2, %v190_v58 }
 0x1da   :  { %v193_v59 = vld [vmem:[#allocation2] sm:$0xff] }
 0x1de   :  { %v194_v60 = vld [vmem:[#allocation2 + $0x8] sm:$0xff] }
 0x1df   :  { %v195_v61 = vpack.c.bf16 %v194_v60, %v193_v59 }
 0x1e1   :  { %336 = vmatmul.mubr.msk.bf16.vlgmr.msra.gmra.mrb[0].mxu1 %vm160_vm2, %v195_v61 }
 0x2b4   :  { %v273_v63 = vpop.f32.mrb[0].mxu1 }
 0x2b5   :  { %v274_v0 = vadd.f32 %v305_v62, %v273_v63  ;;  %v337_v1 = vpop.f32.mrb[1].mxu1 }
 0x2b6   :  { %v276_v2 = vpop.f32.mrb[2].mxu1 }
 0x2b7   :  { %280 = vst [vmem:[#allocation9] sm:$0xff] %v274_v0  ;;  %v277_v3 = vadd.f32 %v305_v62, %v276_v2  ;;  %v338_v4 = vpop.f32.mrb[3].mxu1 }
 0x2b9   :  { %281 = vst [vmem:[#allocation9 + $0x8] sm:$0xff] %v277_v3 }
 0x2ba   :  { %441 = shalt.err (!%p438_p0)
}
 0x2bb   :  { %s442_s10 = scalar_lea.hbm %s580_s5, 256 }
 0x2bc   :  { %p443_p1 = scmp.ne.s32.totalorder %s580_s5, %s442_s10  ;;  %p446_p2 = scmp.lt.u32.totalorder %s442_s10, %s580_s5 }
 0x2be   :  { %p448_p3 = pnand %p446_p2, %p443_p1 }
 0x2c0   :  { %451 = shalt.err (!%p448_p3)
}
 0x2c1   :  { %s466_s15 = smov 128   ;;  %s467_s16 = smov 8  }
 0x2c2   :  { %293 = dma.vmem_to_hbm [thread:$0]  %s288_s7, 256, %s580_s5, [#allocation5], %s466_s15, %s466_s15, %s467_s16  }
 0x2c3   :  { %456 = dma.done.wait [#allocation5], 256  }
 0x2c4   :  { %457 = vsyncadd [#allocation5], 4294967040 }
 0x2c5   :  { %297 = vsyncpa [#allocation4], 1 }
 0x2c6   :  { %298 = vsyncpa [#allocation7], 1 }
 0x2c7   :  { %299 = vsyncpa [#allocation5], 1 }

</bundles_post_ra>
